<compile_context>
chip_gen: v5e
topology: v5e:2x2
jax: 0.10.0
libtpu: 0.0.40
codegen_flags: <defaults>
</compile_context>

<pallas_src>
import jax
import jax.numpy as jnp
from jax.experimental import pallas as pl
from jax.experimental.pallas import tpu as pltpu

_LANE = 128   # lane width   -> OUT padding / tile alignment
_SUBLANE = 8  # sublane size -> batch padding / tile alignment


def _round_up(n, m):
    return ((n + m - 1) // m) * m


def _pick_tile(total, pref, align):
    """Largest tile <= pref that divides `total` (`total` is a multiple of `align`)."""
    t = min(total, pref)
    while total % t:
        t -= align
    return t


def _linear_sigmoid_kernel(x_ref, w_ref, b_ref, o_ref):
    # x_ref: (TB, IN), w_ref: (IN, TN), b_ref: (1, TN), o_ref: (TB, TN)
    logits = jnp.dot(x_ref[...], w_ref[...],
                     preferred_element_type=jnp.float32) + b_ref[...]
    # Exact sigmoid with a single EUP op: sigmoid(z) = 0.5 * (tanh(z/2) + 1).
    o_ref[...] = (0.5 * (jnp.tanh(0.5 * logits) + 1.0)).astype(o_ref.dtype)


def linear_sigmoid(x, w_t_padded, b_padded, out_size):
    """x: (B, IN); w_t_padded: (IN, OUT_P); b_padded: (1, OUT_P) -> (B, out_size)."""
    B, IN = x.shape
    IN_w, OUT_P = w_t_padded.shape
    assert IN == IN_w

    # Pad the batch (sublane) axis to a multiple of 8 so every vector
    # load/store in the kernel is a full (8,128) vreg, not a masked partial.
    B_P = _round_up(B, _SUBLANE)
    x_p = x if B_P == B else jnp.zeros((B_P, IN), x.dtype).at[:B].set(x)

    # Tile batch and OUT_P; both axes are independent -> "parallel" (megacore).
    tb = _pick_tile(B_P, 256, _SUBLANE)
    tn = _pick_tile(OUT_P, 512, _LANE)
    grid = (B_P // tb, OUT_P // tn)

    out_padded = pl.pallas_call(
        _linear_sigmoid_kernel,
        out_shape=jax.ShapeDtypeStruct((B_P, OUT_P), jnp.float32),
        grid=grid,
        in_specs=[
            pl.BlockSpec((tb, IN), lambda i, j: (i, 0)),   # activations
            pl.BlockSpec((IN, tn), lambda i, j: (0, j)),   # pre-transposed weight
            pl.BlockSpec((1, tn), lambda i, j: (0, j)),    # bias row
        ],
        out_specs=pl.BlockSpec((tb, tn), lambda i, j: (i, j)),
        compiler_params=pltpu.CompilerParams(
            dimension_semantics=("parallel", "parallel")),
    )(x_p, w_t_padded, b_padded)

    # Slice back to the true (B, out_size). (Kept for interface correctness;
    # for a fused pipeline the padded slab could flow into the next op.)
    return out_padded[:B, :out_size]


class Model:
    """JAX/Pallas mirror of the PyTorch Model (Linear + sigmoid)."""

    def __init__(self, input_size, output_size, key):
        kw, kb = jax.random.split(key)
        # Deterministic init mimicking nn.Linear's U(-1/sqrt(in), 1/sqrt(in)).
        bound = 1.0 / jnp.sqrt(jnp.float32(input_size))
        self.weight = jax.random.uniform(
            kw, (output_size, input_size), jnp.float32, -bound, bound)
        self.bias = jax.random.uniform(
            kb, (output_size,), jnp.float32, -bound, bound)
        self.output_size = output_size

        # One-time layout work (paid at init, not per call):
        #   - transpose to (IN, OUT) so the kernel gets (M,K)x(K,N)
        #   - zero-pad OUT up to a multiple of 128 for lane-dense stores
        out_p = _round_up(output_size, _LANE)
        w_t = self.weight.T                                   # (IN, OUT)
        self._w_t_pad = jnp.zeros((input_size, out_p), jnp.float32)
        self._w_t_pad = self._w_t_pad.at[:, :output_size].set(w_t)
        self._b_pad = jnp.zeros((1, out_p), jnp.float32)
        self._b_pad = self._b_pad.at[0, :output_size].set(self.bias)

    def forward(self, x):
        return linear_sigmoid(x, self._w_t_pad, self._b_pad, self.output_size)

    def prediction(self, x):
        # Exact sigmoid in forward(), so thresholding at 0.5 is equivalent to
        # thresholding the logits at 0 (matches the PyTorch module).
        pred = self.forward(x)
        return jnp.where(pred >= 0.5, 1, 0)


if __name__ == "__main__":
    key = jax.random.PRNGKey(0)
    k_model, k_x = jax.random.split(key)

    input_size, output_size, batch = 32, 8, 4
    model = Model(input_size, output_size, k_model)

    x = jax.random.normal(k_x, (batch, input_size), jnp.float32)

    out = model.forward(x)
    out = jax.block_until_ready(out)

    # Reference check in plain JAX (exact sigmoid -> tight tolerance).
    ref = jax.nn.sigmoid(x @ model.weight.T + model.bias)
    assert out.shape == (batch, output_size)
    assert jnp.allclose(out, ref, atol=1e-5, rtol=1e-5)

    # Prediction path sanity check: thresholding the kernel's own output.
    pred = jax.block_until_ready(model.prediction(x))
    assert jnp.array_equal(pred, (out >= 0.5).astype(pred.dtype))
    assert pred.shape == (batch, output_size)

    print("KERNEL_OK")
</pallas_src>

<mosaic_0001>
module attributes {stable_mosaic.version = 11 : i64} {
  func.func @_linear_sigmoid_kernel(%arg0: i32, %arg1: i32, %arg2: memref<8x32xf32, #tpu.memory_space<vmem>>, %arg3: memref<32x128xf32, #tpu.memory_space<vmem>>, %arg4: memref<1x128xf32, #tpu.memory_space<vmem>>, %arg5: memref<8x128xf32, #tpu.memory_space<vmem>>) attributes {dimension_semantics = [#tpu.dimension_semantics<parallel>, #tpu.dimension_semantics<parallel>], iteration_bounds = array<i64: 1, 1>, scalar_prefetch = 0 : i64, scratch_operands = 0 : i64, tpu.core_type = #tpu.core_type<tc>, window_params = [{transform_indices = @transform_0, window_bounds = array<i64: 8, 32>}, {transform_indices = @transform_1, window_bounds = array<i64: 32, 128>}, {transform_indices = @transform_2, window_bounds = array<i64: 1, 128>}, {transform_indices = @transform_3, window_bounds = array<i64: 8, 128>}]} {
    %c0 = arith.constant 0 : index
    %c0_0 = arith.constant 0 : index
    %0 = vector.load %arg2[%c0, %c0_0] : memref<8x32xf32, #tpu.memory_space<vmem>>, vector<8x32xf32>
    %c0_1 = arith.constant 0 : index
    %c0_2 = arith.constant 0 : index
    %1 = vector.load %arg3[%c0_1, %c0_2] : memref<32x128xf32, #tpu.memory_space<vmem>>, vector<32x128xf32>
    %cst = arith.constant dense<0.000000e+00> : vector<8x128xf32>
    %2 = tpu.matmul %0, %1, %cst {dimension_numbers = #tpu.dot_dimension_numbers<[1], [0], [0], [1], [0, 0, 1, 1], [], []>} : vector<8x32xf32>, vector<32x128xf32>, vector<8x128xf32> -> vector<8x128xf32>
    %c0_3 = arith.constant 0 : index
    %c0_4 = arith.constant 0 : index
    %3 = vector.load %arg4[%c0_3, %c0_4] : memref<1x128xf32, #tpu.memory_space<vmem>>, vector<1x128xf32>
    %4 = vector.broadcast %3 : vector<1x128xf32> to vector<8x128xf32>
    %5 = arith.addf %2, %4 : vector<8x128xf32>
    %cst_5 = arith.constant 5.000000e-01 : f32
    %6 = vector.broadcast %cst_5 : f32 to vector<8x128xf32>
    %7 = arith.mulf %6, %5 : vector<8x128xf32>
    %8 = math.tanh %7 : vector<8x128xf32>
    %cst_6 = arith.constant 1.000000e+00 : f32
    %9 = vector.broadcast %cst_6 : f32 to vector<8x128xf32>
    %10 = arith.addf %8, %9 : vector<8x128xf32>
    %cst_7 = arith.constant 5.000000e-01 : f32
    %11 = vector.broadcast %cst_7 : f32 to vector<8x128xf32>
    %12 = arith.mulf %11, %10 : vector<8x128xf32>
    %c0_8 = arith.constant 0 : index
    %c0_9 = arith.constant 0 : index
    %13 = vector.load %arg5[%c0_8, %c0_9] : memref<8x128xf32, #tpu.memory_space<vmem>>, vector<8x128xf32>
    tpu.vector_store %arg5[%c0_8, %c0_9], %12 {strides = array<i32>} : memref<8x128xf32, #tpu.memory_space<vmem>>, vector<8x128xf32>,
    return
  }
  func.func @transform_0(%arg0: i32, %arg1: i32) -> (i32, i32) {
    %c0_i32 = arith.constant 0 : i32
    %c0_i32_0 = arith.constant 0 : i32
    return %arg0, %c0_i32 : i32, i32
  }
  func.func @transform_1(%arg0: i32, %arg1: i32) -> (i32, i32) {
    %c0_i32 = arith.constant 0 : i32
    %c0_i32_0 = arith.constant 0 : i32
    return %c0_i32, %arg1 : i32, i32
  }
  func.func @transform_2(%arg0: i32, %arg1: i32) -> (i32, i32) {
    %c0_i32 = arith.constant 0 : i32
    %c0_i32_0 = arith.constant 0 : i32
    return %c0_i32, %arg1 : i32, i32
  }
  func.func @transform_3(%arg0: i32, %arg1: i32) -> (i32, i32) {
    %c0_i32 = arith.constant 0 : i32
    return %arg0, %arg1 : i32, i32
  }
}

</mosaic_0001>

<bundles_post_ra>
// kernel: tpu_custom_call.1
= control target key start
LH: loop header
LB: loop body
LE: loop exit
PB: predicated region body
PF: predicated region fallthrough
CT: control target
= control target key end

     0   :  { %8 = vsyncpa [#allocation3], 0  ;;  %s225_s0 = inlined_call_operand.hbm [shape: f32[8,32], index: 0, kind: input, shape index: {}]   ;;  %s226_s1 = inlined_call_operand.hbm [shape: f32[32,128], index: 1, kind: input, shape index: {}]   ;;  %s227_s2 = inlined_call_operand.vmem [shape: f32[1,128], index: 2, kind: input, shape index: {}]   ;;  %s228_s3 = inlined_call_operand.hbm [shape: f32[8,128], index: 3, kind: output, shape index: {}]  }
   0x1   :  { %9 = vsyncpa [#allocation6], 0 }
   0x2   :  { %10 = vsyncpa [#allocation4], 0  ;;  %s16_s14 = sshll.u32 %s225_s0, 4  ;;  %s188_s15 = smov [#allocation2]   ;;  %s17_s14 = int_to_ptr.hbm [resolvable:$true] %s16_s14 }
   0x3   :  { %s18_s16 = sshll.u32 %s188_s15, 4  ;;  %s26_s19 = sshll.u32 %s226_s1, 4  ;;  %s19_s16 = int_to_ptr.vmem [resolvable:$true] %s18_s16  ;;  %s27_s19 = int_to_ptr.hbm [resolvable:$true] %s26_s19 }
   0x4   :  { %21 = dma.hbm_to_vmem [thread:$0]  %s17_s14, 128, %s19_s16, [#allocation3]  }
   0x5   :  { %s189_s20 = smov [#allocation5]   ;;  %s190_s22 = smov 128  }
   0x6   :  { %s28_s21 = sshll.u32 %s189_s20, 4  ;;  %s191_s23 = smov 8   ;;  %s29_s21 = int_to_ptr.vmem [resolvable:$true] %s28_s21 }
   0x7   :  { %34 = dma.hbm_to_vmem [thread:$0]  %s27_s19, 512, %s29_s21, [#allocation6], %s190_s22, %s190_s22, %s191_s23  }
   0x8   :  { %182 = dma.done.wait [#allocation3], 128  }
   0x9   :  { %183 = vsyncadd [#allocation3], 4294967168 }
   0xa   :  { %184 = dma.done.wait [#allocation6], 512  }
   0xb   :  { %185 = vsyncadd [#allocation6], 4294966784  ;;  %v49_v0 = vld [vmem:[#allocation5 + $0x18] sm:$0xff]  ;;  %v48_v1 = vld [vmem:[#allocation5 + $0x10] sm:$0xff]  ;;  %vm54_vm0 = vcmask 261120   ;;  %s192_s24 = smov [#allocation7]  }
   0xc   :  { %70 = vmatpush.msra.mxu0 %v49_v0  ;;  %v47_v2 = vld [vmem:[#allocation5 + $0x8] sm:$0xff]  ;;  %v46_v3 = vld [vmem:[#allocation5] sm:$0xff]  ;;  %v45_v4 = vld [vmem:[#allocation2] sm:$0xff]  ;;  %s88_s25 = sshll.u32 %s192_s24, 4  ;;  %s90_s28 = sshll.u32 %s228_s3, 4  ;;  %s89_s25 = int_to_ptr.vmem [resolvable:$true] %s88_s25  ;;  %s91_s28 = int_to_ptr.hbm [resolvable:$true] %s90_s28 }
   0xd   :  { %v107_v5 = vld [vmem:[%s227_s2] ss:$0 sm:$0xff] }
   0xe   :  { %71 = vmatpush.msra.mxu0 %v48_v1 }
  0x10   :  { %72 = vmatpush.msra.mxu0 %v47_v2 }
  0x12   :  { %73 = vmatpush.msra.mxu0 %v46_v3 }
  0x13   :  { %101 = vmatmul.msk.f32.vlgmr.msra.gmra.mxu0 %vm54_vm0, %v45_v4 }
  0x90   :  { %v75_v6 = vpop.f32.mrf.mxu0 }
  0x91   :  { %v76_v7 = vadd.f32 %v107_v5, %v75_v6 }
  0x93   :  { %v78_v8 = vmul.f32 0.5, %v76_v7 }
  0x95   :  { %108 = vtanh.f32 %v78_v8 }
  0x9b   :  { %v109_v9 = vpop.eup %108 }
  0x9c   :  { %v80_v10 = vadd.f32 1.0, %v109_v9 }
  0x9e   :  { %v81_v11 = vmul.f32 0.5, %v80_v10 }
  0xa0   :  { %82 = vst [vmem:[#allocation7] sm:$0xff] %v81_v11 }
  0xa1   :  { %93 = dma.vmem_to_hbm [thread:$0]  %s89_s25, 128, %s91_s28, [#allocation4]  }
  0xa2   :  { %186 = dma.done.wait [#allocation4], 128  }
  0xa3   :  { %187 = vsyncadd [#allocation4], 4294967168 }
  0xa4   :  { %98 = vsyncpa [#allocation3], 1 }
  0xa5   :  { %99 = vsyncpa [#allocation6], 1 }
  0xa6   :  { %100 = vsyncpa [#allocation4], 1 }

</bundles_post_ra>
